<compile_context>
chip_gen: v5e
topology: v5e:2x2
jax: 0.10.0
libtpu: 0.0.40
codegen_flags: <defaults>
</compile_context>

<pallas_src>
import functools

import jax
import jax.numpy as jnp
from jax import lax
from jax.experimental import pallas as pl
from jax.experimental.pallas import tpu as pltpu

LANE_COLS = 1024      # lane-dense last dim (multiple of 128)
BLOCK_ROWS = 512      # up to 512x1024 f32 = 2 MiB per block (fits v7x VMEM easily)

_TWO_PI = 6.283185307179586
_INV_U16 = 1.0 / 65536.0


def _hash_u32(x):
    # lowbias32 integer mixer (Wellons): xor-shift / multiply rounds.
    # Good statistical quality on sequential counters; all ops are plain
    # 32-bit VPU ops (xor, logical shift, wrapping multiply).
    x = x ^ (x >> jnp.uint32(16))
    x = x * jnp.uint32(0x21F0AAAD)
    x = x ^ (x >> jnp.uint32(15))
    x = x * jnp.uint32(0xD35A2D97)
    x = x ^ (x >> jnp.uint32(15))
    return x


def _gaussian_kernel(seed_ref, x_ref, o_ref, *, mean, std):
    rows, cols = x_ref.shape          # static block shape
    half = cols // 2                  # cols is always LANE_COLS (even)

    # ---- counter-based PRNG: one 32-bit draw feeds two output elements ----
    i = pl.program_id(0)
    row = lax.broadcasted_iota(jnp.int32, (rows, half), 0)
    col = lax.broadcasted_iota(jnp.int32, (rows, half), 1)
    ctr = (i * rows + row) * half + col                      # globally unique
    state = ctr.astype(jnp.uint32) + (
        seed_ref[0].astype(jnp.uint32) * jnp.uint32(2654435761))
    bits = _hash_u32(state)

    # hi/lo 16 bits -> two uniforms in (0, 1); convert via int32 (values < 2^16).
    hi = (bits >> jnp.uint32(16)).astype(jnp.int32).astype(jnp.float32)
    lo = (bits & jnp.uint32(0xFFFF)).astype(jnp.int32).astype(jnp.float32)
    u1 = (hi + 0.5) * jnp.float32(_INV_U16)
    u2 = (lo + 0.5) * jnp.float32(_INV_U16)

    # ---- Box-Muller: use BOTH outputs (cos half / sin half of the block) ----
    r = jnp.sqrt(jnp.float32(-2.0) * jnp.log(u1))
    theta = jnp.float32(_TWO_PI) * u2
    m = jnp.float32(mean)
    s = jnp.float32(std)
    eps_cos = m + s * (r * jnp.cos(theta))
    eps_sin = m + s * (r * jnp.sin(theta))

    x = x_ref[...].astype(jnp.float32)
    # Two contiguous, 128-aligned, unmasked stores (one per lane-half).
    o_ref[:, :half] = (x[:, :half] * eps_cos).astype(o_ref.dtype)
    o_ref[:, half:] = (x[:, half:] * eps_sin).astype(o_ref.dtype)


def gaussian_dropout(x, p_val, seed=0, training=True):
    """Multiplicative Gaussian noise: x * N(1, p/(1-p)), elementwise."""
    if not training:
        return x
    if not (0.0 <= float(p_val) < 1.0):
        raise ValueError("p_val must be in [0, 1) for std = p / (1 - p)")
    mean = 1.0
    std = float(p_val) / (1.0 - float(p_val))

    orig_shape = x.shape
    flat = x.reshape(-1)              # contiguous reshape: no copy
    n = flat.shape[0]

    pad = (-n) % LANE_COLS
    if pad:
        # Only hit when n is not a multiple of 1024 (costs one extra copy).
        flat = jnp.pad(flat, (0, pad))
    rows = flat.shape[0] // LANE_COLS
    x2d = flat.reshape(rows, LANE_COLS)

    # Block rows: big when possible, full extent when the slab is small
    # (a full-extent dim is exempt from the (8,128) divisibility rule).
    block_rows = min(BLOCK_ROWS, rows)
    grid = (pl.cdiv(rows, block_rows),)
    seed_arr = jnp.array([seed], dtype=jnp.int32)

    out2d = pl.pallas_call(
        functools.partial(_gaussian_kernel, mean=mean, std=std),
        out_shape=jax.ShapeDtypeStruct((rows, LANE_COLS), x.dtype),
        grid_spec=pltpu.PrefetchScalarGridSpec(
            num_scalar_prefetch=1,
            grid=grid,
            in_specs=[pl.BlockSpec((block_rows, LANE_COLS),
                                   lambda i, seed: (i, 0))],
            out_specs=pl.BlockSpec((block_rows, LANE_COLS),
                                   lambda i, seed: (i, 0)),
        ),
        compiler_params=pltpu.CompilerParams(
            # Per-block counter-based PRNG -> no sequential dependency, so the
            # grid can shard across TensorCores (v7x megacore).
            dimension_semantics=("parallel",)),
    )(seed_arr, x2d)

    out_flat = out2d.reshape(-1)
    if pad:
        out_flat = out_flat[:n]
    return out_flat.reshape(orig_shape)


if __name__ == "__main__":
    key = jax.random.PRNGKey(0)
    # NCHW, matching the PyTorch module's typical conv-style input.
    x = jax.random.normal(key, (2, 4, 16, 16), dtype=jnp.float32)
    p_val = 0.3  # std = 0.3 / 0.7

    y = gaussian_dropout(x, p_val, seed=1234)
    y = jax.block_until_ready(y)

    assert y.shape == x.shape and y.dtype == x.dtype
    assert bool(jnp.all(jnp.isfinite(y)))
    # Sanity: eps ~ N(1, p/(1-p)); check mean and spread of the noise ratio.
    ratio = y / jnp.where(jnp.abs(x) > 1e-6, x, 1.0)
    assert bool(jnp.abs(jnp.mean(ratio) - 1.0) < 0.1)
    assert bool(jnp.abs(jnp.std(ratio) - (p_val / (1.0 - p_val))) < 0.15)

    print("KERNEL_OK")
</pallas_src>

<mosaic_0001>
module attributes {stable_mosaic.version = 11 : i64} {
  func.func @_gaussian_kernel(%arg0: i32, %arg1: memref<1xi32, #tpu.memory_space<smem>>, %arg2: memref<2x1024xf32, #tpu.memory_space<vmem>>, %arg3: memref<2x1024xf32, #tpu.memory_space<vmem>>) attributes {dimension_semantics = [#tpu.dimension_semantics<parallel>], iteration_bounds = array<i64: 1>, scalar_prefetch = 1 : i64, scratch_operands = 0 : i64, tpu.core_type = #tpu.core_type<tc>, window_params = [{transform_indices = @transform_0, window_bounds = array<i64: 2, 1024>}, {transform_indices = @transform_1, window_bounds = array<i64: 2, 1024>}]} {
    %0 = tpu.iota {dimensions = array<i32: 0>} : vector<2x512xi32>
    %1 = tpu.iota {dimensions = array<i32: 1>} : vector<2x512xi32>
    %c2_i32 = arith.constant 2 : i32
    %2 = arith.muli %arg0, %c2_i32 : i32
    %3 = vector.broadcast %2 : i32 to vector<2x512xi32>
    %4 = arith.addi %3, %0 : vector<2x512xi32>
    %c512_i32 = arith.constant 512 : i32
    %5 = vector.broadcast %c512_i32 : i32 to vector<2x512xi32>
    %6 = arith.muli %4, %5 : vector<2x512xi32>
    %7 = arith.addi %6, %1 : vector<2x512xi32>
    %c0 = arith.constant 0 : index
    %8 = memref.load %arg1[%c0] : memref<1xi32, #tpu.memory_space<smem>>
    %c-1640531535_i32 = arith.constant -1640531535 : i32
    %9 = arith.muli %8, %c-1640531535_i32 : i32
    %10 = vector.broadcast %9 : i32 to vector<2x512xi32>
    %11 = arith.addi %7, %10 : vector<2x512xi32>
    %c16_i32 = arith.constant 16 : i32
    %12 = vector.broadcast %c16_i32 : i32 to vector<2x512xi32>
    %13 = arith.shrui %11, %12 : vector<2x512xi32>
    %14 = arith.xori %11, %13 : vector<2x512xi32>
    %c569420461_i32 = arith.constant 569420461 : i32
    %15 = vector.broadcast %c569420461_i32 : i32 to vector<2x512xi32>
    %16 = arith.muli %14, %15 : vector<2x512xi32>
    %c15_i32 = arith.constant 15 : i32
    %17 = vector.broadcast %c15_i32 : i32 to vector<2x512xi32>
    %18 = arith.shrui %16, %17 : vector<2x512xi32>
    %19 = arith.xori %16, %18 : vector<2x512xi32>
    %c-749064809_i32 = arith.constant -749064809 : i32
    %20 = vector.broadcast %c-749064809_i32 : i32 to vector<2x512xi32>
    %21 = arith.muli %19, %20 : vector<2x512xi32>
    %c15_i32_0 = arith.constant 15 : i32
    %22 = vector.broadcast %c15_i32_0 : i32 to vector<2x512xi32>
    %23 = arith.shrui %21, %22 : vector<2x512xi32>
    %24 = arith.xori %21, %23 : vector<2x512xi32>
    %c16_i32_1 = arith.constant 16 : i32
    %25 = vector.broadcast %c16_i32_1 : i32 to vector<2x512xi32>
    %26 = arith.shrui %24, %25 : vector<2x512xi32>
    %27 = arith.sitofp %26 : vector<2x512xi32> to vector<2x512xf32>
    %c65535_i32 = arith.constant 65535 : i32
    %28 = vector.broadcast %c65535_i32 : i32 to vector<2x512xi32>
    %29 = arith.andi %24, %28 : vector<2x512xi32>
    %30 = arith.sitofp %29 : vector<2x512xi32> to vector<2x512xf32>
    %cst = arith.constant 5.000000e-01 : f32
    %31 = vector.broadcast %cst : f32 to vector<2x512xf32>
    %32 = arith.addf %27, %31 : vector<2x512xf32>
    %cst_2 = arith.constant 1.52587891E-5 : f32
    %33 = vector.broadcast %cst_2 : f32 to vector<2x512xf32>
    %34 = arith.mulf %32, %33 : vector<2x512xf32>
    %cst_3 = arith.constant 5.000000e-01 : f32
    %35 = vector.broadcast %cst_3 : f32 to vector<2x512xf32>
    %36 = arith.addf %30, %35 : vector<2x512xf32>
    %cst_4 = arith.constant 1.52587891E-5 : f32
    %37 = vector.broadcast %cst_4 : f32 to vector<2x512xf32>
    %38 = arith.mulf %36, %37 : vector<2x512xf32>
    %39 = math.log %34 : vector<2x512xf32>
    %cst_5 = arith.constant -2.000000e+00 : f32
    %40 = vector.broadcast %cst_5 : f32 to vector<2x512xf32>
    %41 = arith.mulf %40, %39 : vector<2x512xf32>
    %42 = math.sqrt %41 : vector<2x512xf32>
    %cst_6 = arith.constant 6.28318548 : f32
    %43 = vector.broadcast %cst_6 : f32 to vector<2x512xf32>
    %44 = arith.mulf %43, %38 : vector<2x512xf32>
    %45 = math.cos %44 : vector<2x512xf32>
    %46 = arith.mulf %42, %45 : vector<2x512xf32>
    %cst_7 = arith.constant 0.428571433 : f32
    %47 = vector.broadcast %cst_7 : f32 to vector<2x512xf32>
    %48 = arith.mulf %47, %46 : vector<2x512xf32>
    %cst_8 = arith.constant 1.000000e+00 : f32
    %49 = vector.broadcast %cst_8 : f32 to vector<2x512xf32>
    %50 = arith.addf %49, %48 : vector<2x512xf32>
    %51 = math.sin %44 : vector<2x512xf32>
    %52 = arith.mulf %42, %51 : vector<2x512xf32>
    %cst_9 = arith.constant 0.428571433 : f32
    %53 = vector.broadcast %cst_9 : f32 to vector<2x512xf32>
    %54 = arith.mulf %53, %52 : vector<2x512xf32>
    %cst_10 = arith.constant 1.000000e+00 : f32
    %55 = vector.broadcast %cst_10 : f32 to vector<2x512xf32>
    %56 = arith.addf %55, %54 : vector<2x512xf32>
    %c0_11 = arith.constant 0 : index
    %c0_12 = arith.constant 0 : index
    %57 = vector.load %arg2[%c0_11, %c0_12] : memref<2x1024xf32, #tpu.memory_space<vmem>>, vector<2x1024xf32>
    %58 = vector.extract_strided_slice %57 {offsets = [0, 0], sizes = [2, 512], strides = [1, 1]} : vector<2x1024xf32> to vector<2x512xf32>
    %59 = arith.mulf %58, %50 : vector<2x512xf32>
    %c0_13 = arith.constant 0 : index
    %c0_14 = arith.constant 0 : index
    %60 = vector.load %arg3[%c0_13, %c0_14] : memref<2x1024xf32, #tpu.memory_space<vmem>>, vector<2x512xf32>
    tpu.vector_store %arg3[%c0_13, %c0_14], %59 {strides = array<i32>} : memref<2x1024xf32, #tpu.memory_space<vmem>>, vector<2x512xf32>,
    %61 = vector.extract_strided_slice %57 {offsets = [0, 512], sizes = [2, 512], strides = [1, 1]} : vector<2x1024xf32> to vector<2x512xf32>
    %62 = arith.mulf %61, %56 : vector<2x512xf32>
    %c0_15 = arith.constant 0 : index
    %c512 = arith.constant 512 : index
    %63 = vector.load %arg3[%c0_15, %c512] : memref<2x1024xf32, #tpu.memory_space<vmem>>, vector<2x512xf32>
    tpu.vector_store %arg3[%c0_15, %c512], %62 {strides = array<i32>} : memref<2x1024xf32, #tpu.memory_space<vmem>>, vector<2x512xf32>,
    return
  }
  func.func @transform_0(%arg0: i32, %arg1: memref<1xi32, #tpu.memory_space<smem>>) -> (i32, i32) {
    %c0_i32 = arith.constant 0 : i32
    %c0_i32_0 = arith.constant 0 : i32
    return %arg0, %c0_i32 : i32, i32
  }
  func.func @transform_1(%arg0: i32, %arg1: memref<1xi32, #tpu.memory_space<smem>>) -> (i32, i32) {
    %c0_i32 = arith.constant 0 : i32
    %c0_i32_0 = arith.constant 0 : i32
    return %arg0, %c0_i32 : i32, i32
  }
}

</mosaic_0001>

<bundles_post_ra>
// kernel: tpu_custom_call.1
= control target key start
LH: loop header
LB: loop body
LE: loop exit
PB: predicated region body
PF: predicated region fallthrough
CT: control target
= control target key end

     0   :  { %8 = vsyncpa [#allocation5], 0  ;;  %s2252_s0 = inlined_call_operand.<no memory space> [shape: s32[1], index: 0, kind: input, shape index: {}]   ;;  %s2253_s1 = inlined_call_operand.hbm [shape: f32[2,1024], index: 1, kind: input, shape index: {}]   ;;  %s2254_s2 = inlined_call_operand.hbm [shape: f32[2,1024], index: 2, kind: output, shape index: {}]  }
   0x1   :  { %9 = vsyncpa [#allocation6], 0  ;;  %s15_s11 = sshll.u32 %s2253_s1, 4  ;;  %s1584_s12 = smov [#allocation4]   ;;  %s16_s11 = int_to_ptr.hbm [resolvable:$true] %s15_s11 }
   0x2   :  { %s17_s13 = sshll.u32 %s1584_s12, 4  ;;  %s18_s13 = int_to_ptr.vmem [resolvable:$true] %s17_s13 }
   0x3   :  { %20 = dma.hbm_to_vmem [thread:$0]  %s16_s11, 256, %s18_s13, [#allocation5]  }
   0x4   :  { %1580 = dma.done.wait [#allocation5], 256  }
   0x5   :  { %1581 = vsyncadd [#allocation5], 4294967040  ;;  %v25_v0 = vlaneseq  ;;  %s41_s16 = smul.u32 2654435761, %s2252_s0  ;;  %v1585_v62 = vmov 683565275  }
   0x6   :  { %s1592_s0 = smov [#allocation7]   ;;  %s1473_s19 = sshll.u32 %s2254_s2, 4  ;;  %s1474_s19 = int_to_ptr.hbm [resolvable:$true] %s1473_s19 }
   0x7   :  { %v26_v1 = vshrl.u32 %v25_v0, 7  ;;  %v28_v2 = vand.u32 127, %v25_v0  ;;  %v42_v5 = vstv %s41_s16  ;;  %v1586_v0 = vmov 2475754826   ;;  %s1471_s1 = sshll.u32 %s1592_s0, 4  ;;  %s1472_s1 = int_to_ptr.vmem [resolvable:$true] %s1471_s1 }
   0x9   :  { %v29_v3 = vadd.s32 128, %v28_v2  ;;  %v35_v4 = vmul.u32 512, %v26_v1  ;;  %v30_v12 = vadd.s32 256, %v28_v2  ;;  %v31_v43 = vadd.s32 384, %v28_v2 }
   0xb   :  { %v36_v6 = vadd.s32 %v35_v4, %v28_v2  ;;  %v37_v7 = vadd.s32 %v35_v4, %v29_v3  ;;  %v38_v17 = vadd.s32 %v35_v4, %v30_v12  ;;  %v39_v48 = vadd.s32 %v35_v4, %v31_v43 }
   0xc   :  { %v1587_v4 = vmov 2131351028   ;;  %v1589_v12 = vmov 920167782  }
   0xd   :  { %v43_v8 = vadd.s32 %v42_v5, %v36_v6  ;;  %v44_v9 = vadd.s32 %v42_v5, %v37_v7  ;;  %v45_v22 = vadd.s32 %v42_v5, %v38_v17  ;;  %v46_v51 = vadd.s32 %v42_v5, %v39_v48 }
   0xe   :  { %v1588_v6 = vmov 2102212464  }
   0xf   :  { %v47_v10 = vshrl.u32 %v43_v8, 16  ;;  %v48_v11 = vshrl.u32 %v44_v9, 16  ;;  %v49_v27 = vshrl.u32 %v45_v22, 16  ;;  %v50_v57 = vshrl.u32 %v46_v51, 16 }
  0x11   :  { %v51_v13 = vxor.u32 %v47_v10, %v43_v8  ;;  %v52_v14 = vxor.u32 %v48_v11, %v44_v9  ;;  %v53_v32 = vxor.u32 %v49_v27, %v45_v22 }
  0x13   :  { %v55_v15 = vmul.u32 569420461, %v51_v13  ;;  %v56_v16 = vmul.u32 569420461, %v52_v14  ;;  %v57_v36 = vmul.u32 569420461, %v53_v32  ;;  %v1640_v14 = vxor.u32 %v50_v57, %v46_v51 }
  0x15   :  { %v59_v18 = vshrl.u32 %v55_v15, 15  ;;  %v60_v19 = vshrl.u32 %v56_v16, 15  ;;  %v61_v40 = vshrl.u32 %v57_v36, 15 }
  0x17   :  { %v63_v20 = vxor.u32 %v59_v18, %v55_v15  ;;  %v64_v21 = vxor.u32 %v60_v19, %v56_v16  ;;  %v65_v45 = vxor.u32 %v61_v40, %v57_v36  ;;  %v1590_v19 = vmov 1326507024  }
  0x19   :  { %v67_v23 = vmul.u32 3545902487, %v63_v20  ;;  %v68_v24 = vmul.u32 3545902487, %v64_v21  ;;  %v69_v50 = vmul.u32 3545902487, %v65_v45 }
  0x1b   :  { %v71_v25 = vshrl.u32 %v67_v23, 15  ;;  %v72_v26 = vshrl.u32 %v68_v24, 15  ;;  %v73_v53 = vshrl.u32 %v69_v50, 15 }
  0x1d   :  { %v1614_v28 = vxor.u32 %v71_v25, %v67_v23  ;;  %v1616_v29 = vxor.u32 %v72_v26, %v68_v24  ;;  %v1627_v59 = vxor.u32 %v73_v53, %v69_v50  ;;  %v58_v25 = vmul.u32 569420461, %v1640_v14 }
  0x1f   :  { %v87_v30 = vand.u32 65535, %v1614_v28  ;;  %v88_v31 = vand.u32 65535, %v1616_v29  ;;  %v89_v9 = vand.u32 65535, %v1627_v59 }
  0x21   :  { %v91_v33 = vcvt.s32.f32 %v87_v30  ;;  %v92_v35 = vcvt.s32.f32 %v88_v31  ;;  %v93_v23 = vcvt.s32.f32 %v89_v9 }
  0x23   :  { %v103_v34 = vadd.f32 0.5, %v91_v33  ;;  %v104_v39 = vadd.f32 0.5, %v92_v35  ;;  %v105_v33 = vadd.f32 0.5, %v93_v23  ;;  %v1591_v23 = vmov 0  }
  0x25   :  { %v107_v37 = vmul.f32 1.5258789e-05, %v103_v34  ;;  %v108_v44 = vmul.f32 1.5258789e-05, %v104_v39  ;;  %v1665_v50 = vmul.f32 1.5258789e-05, %v105_v33 }
  0x27   :  { %v1620_v38 = vmul.f32 6.2831855, %v107_v37  ;;  %v1623_v49 = vmul.f32 6.2831855, %v108_v44  ;;  %v1655_v37 = vshrl.u32 %v58_v25, 15 }
  0x29   :  { %v178_v41 = vand.u32 2139095040, %v1620_v38  ;;  %v332_v52 = vand.u32 2139095040, %v1623_v49  ;;  %v175_v54 = vand.u32 2147483647, %v1620_v38  ;;  %v329_v36 = vand.u32 2147483647, %v1623_v49 }
  0x2b   :  { %v179_v42 = vshrl.u32 %v178_v41, 23  ;;  %v333_v58 = vshrl.u32 %v332_v52, 23  ;;  %v182_v61 = vand.u32 8388607, %v175_v54  ;;  %v1670_v53 = vand.u32 8388607, %v329_v36 }
  0x2d   :  { %v1483_v46 = vadd.s32 4294967169, %v179_v42  ;;  %v1486_v8 = vadd.s32 4294967169, %v333_v58  ;;  %v183_v15 = vor.u32 8388608, %v182_v61 }
  0x2f   :  { %v185_v47 = vadd.s32 1, %v1483_v46  ;;  %v339_v22 = vadd.s32 1, %v1486_v8  ;;  %v1646_v30 = vshll.u32 %v183_v15, 8 }
  0x31   :  { %vm186_vm0 = vcmp.gt.s32.totalorder %v185_v47, 0  ;;  %vm340_vm5 = vcmp.gt.s32.totalorder %v339_v22, 0  ;;  %v225_v40 = vshrl.u32 %v1646_v30, 16  ;;  %v224_v43 = vand.u32 65535, %v1646_v30 }
  0x32   :  { %v187_v55 = vsel %vm186_vm0, %v185_v47, 0  ;;  %v341_v44 = vsel %vm340_vm5, %v339_v22, 0 }
  0x33   :  { %v189_v56 = vand.u32 31, %v187_v55  ;;  %v188_v3 = vshrl.u32 %v187_v55, 5 }
  0x35   :  { %v190_v60 = vsub.s32 32, %v189_v56  ;;  %v192_v63 = vshll.u32 %v1585_v62, %v189_v56  ;;  %v195_v2 = vshll.u32 %v1586_v0, %v189_v56  ;;  %v201_v7 = vshll.u32 %v1588_v6, %v189_v56 }
  0x36   :  { %v198_v10 = vshll.u32 %v1587_v4, %v189_v56  ;;  %v204_v18 = vshll.u32 %v1589_v12, %v189_v56  ;;  %vm207_vm1 = vcmp.lt.s32.totalorder %v188_v3, 1  ;;  %vm209_vm2 = vcmp.lt.s32.totalorder %v188_v3, 3 }
  0x37   :  { %v193_v1 = vshrl.u32 %v1586_v0, %v190_v60  ;;  %v196_v5 = vshrl.u32 %v1587_v4, %v190_v60  ;;  %v199_v11 = vshrl.u32 %v1588_v6, %v190_v60  ;;  %v202_v13 = vshrl.u32 %v1589_v12, %v190_v60 }
  0x38   :  { %v205_v20 = vshrl.u32 %v1590_v19, %v190_v60  ;;  %vm210_vm3 = vcmp.lt.s32.totalorder %v188_v3, 4  ;;  %vm208_vm4 = vcmp.lt.s32.totalorder %v188_v3, 2  ;;  %v191_v31 = vshrl.u32 %v1585_v62, %v190_v60 }
  0x39   :  { %v194_v16 = vor.u32 %v193_v1, %v192_v63  ;;  %v197_v17 = vor.u32 %v196_v5, %v195_v2  ;;  %v203_v21 = vor.u32 %v202_v13, %v201_v7  ;;  %v200_v24 = vor.u32 %v199_v11, %v198_v10 }
  0x3a   :  { %v206_v26 = vor.u32 %v205_v20, %v204_v18  ;;  %v343_v63 = vand.u32 31, %v341_v44  ;;  %v1675_v11 = vshrl.u32 %v341_v44, 5 }
  0x3b   :  { %v215_v27 = vsel %vm207_vm1, %v194_v16, %v197_v17  ;;  %v216_v32 = vsel %vm210_vm3, %v203_v21, 920167782  ;;  %v212_v34 = vsel %vm210_vm3, %v200_v24, 2102212464  ;;  %v219_v41 = vsel %vm207_vm1, %v197_v17, %v200_v24 }
  0x3c   :  { %v217_v35 = vsel %vm209_vm2, %v200_v24, %v216_v32  ;;  %v220_v42 = vsel %vm210_vm3, %v206_v26, 1326507024  ;;  %v211_v45 = vsel %vm207_vm1, %v191_v31, %v194_v16  ;;  %v213_v46 = vsel %vm209_vm2, %v197_v17, %v212_v34 }
  0x3d   :  { %v218_v39 = vsel %vm208_vm4, %v215_v27, %v217_v35  ;;  %v221_v47 = vsel %vm209_vm2, %v203_v21, %v220_v42  ;;  %v1673_v58 = vsel %vm208_vm4, %v211_v45, %v213_v46  ;;  %v1677_v20 = vsub.s32 32, %v343_v63 }
  0x3e   :  { %v248_v48 = vand.u32 65535, %v218_v39  ;;  %v222_v51 = vsel %vm208_vm4, %v219_v41, %v221_v47  ;;  %v249_v52 = vshrl.u32 %v218_v39, 16  ;;  %v346_v31 = vshll.u32 %v1585_v62, %v343_v63 }
  0x3f   :  { %v226_v55 = vand.u32 65535, %v222_v51  ;;  %v227_v56 = vshrl.u32 %v222_v51, 16  ;;  %v349_v34 = vshll.u32 %v1586_v0, %v343_v63  ;;  %v350_v41 = vshrl.u32 %v1587_v4, %v1677_v20 }
  0x40   :  { %v252_v57 = vmul.u32 %v248_v48, %v225_v40  ;;  %v250_v60 = vmul.u32 %v248_v48, %v224_v43  ;;  %v251_v61 = vmul.u32 %v249_v52, %v224_v43  ;;  %v253_v7 = vmul.u32 %v249_v52, %v225_v40 }
  0x41   :  { %v228_v1 = vmul.u32 %v226_v55, %v224_v43  ;;  %v229_v2 = vmul.u32 %v227_v56, %v224_v43  ;;  %v230_v5 = vmul.u32 %v226_v55, %v225_v40  ;;  %v231_v8 = vmul.u32 %v227_v56, %v225_v40 }
  0x42   :  { %v254_v9 = vshll.u32 %v251_v61, 16  ;;  %v256_v10 = vshll.u32 %v252_v57, 16  ;;  %v255_v16 = vshrl.u32 %v251_v61, 16  ;;  %v257_v17 = vshrl.u32 %v252_v57, 16 }
  0x43   :  { %v232_v13 = vshll.u32 %v229_v2, 16  ;;  %v234_v15 = vshll.u32 %v230_v5, 16  ;;  %v233_v18 = vshrl.u32 %v229_v2, 16  ;;  %v235_v21 = vshrl.u32 %v230_v5, 16 }
  0x44   :  { %vm258_vm6 = vc.u32 %v250_v60, %v254_v9  ;;  %v260_v3 = vadd.s32 %v254_v9, %v250_v60  ;;  %v347_v40 = vshrl.u32 %v1586_v0, %v1677_v20  ;;  %v352_v43 = vshll.u32 %v1587_v4, %v343_v63 }
  0x45   :  { %vm236_vm7 = vc.u32 %v228_v1, %v232_v13  ;;  %v238_v22 = vadd.s32 %v232_v13, %v228_v1  ;;  %v259_v24 = vsel %vm258_vm6, 1, %v1591_v23  ;;  %v353_v44 = vshrl.u32 %v1588_v6, %v1677_v20 }
  0x46   :  { %v237_v26 = vsel %vm236_vm7, 1, %v1591_v23  ;;  %v261_v27 = vadd.s32 %v259_v24, %v253_v7  ;;  %vm262_vm8 = vc.u32 %v260_v3, %v256_v10  ;;  %v355_v45 = vshll.u32 %v1588_v6, %v343_v63 }
  0x47   :  { %v239_v32 = vadd.s32 %v237_v26, %v231_v8  ;;  %vm240_vm9 = vc.u32 %v238_v22, %v234_v15  ;;  %v263_v33 = vsel %vm262_vm8, 1, %v1591_v23  ;;  %v1693_v46 = vadd.s32 %v260_v3, %v256_v10 }
  0x48   :  { %v241_v35 = vsel %vm240_vm9, 1, %v1591_v23  ;;  %v265_v39 = vadd.s32 %v263_v33, %v261_v27  ;;  %v1695_v48 = vor.u32 %v347_v40, %v346_v31  ;;  %v356_v51 = vshrl.u32 %v1589_v12, %v1677_v20 }
  0x49   :  { %v243_v42 = vadd.s32 %v241_v35, %v239_v32  ;;  %v1699_v55 = vor.u32 %v350_v41, %v349_v34  ;;  %v358_v56 = vshll.u32 %v1589_v12, %v343_v63  ;;  %v359_v57 = vshrl.u32 %v1590_v19, %v1677_v20 }
  0x4a   :  { %v266_v47 = vadd.s32 %v265_v39, %v255_v16  ;;  %v268_v61 = vmul.u32 %v1646_v30, %v1673_v58  ;;  %v357_v1 = vor.u32 %v356_v51, %v355_v45  ;;  %vm361_vm10 = vcmp.lt.s32.totalorder %v1675_v11, 1 }
  0x4b   :  { %v244_v52 = vadd.s32 %v243_v42, %v233_v18  ;;  %v354_v5 = vor.u32 %v353_v44, %v352_v43  ;;  %v360_v7 = vor.u32 %v359_v57, %v358_v56  ;;  %vm364_vm11 = vcmp.lt.s32.totalorder %v1675_v11, 4 }
  0x4c   :  { %v267_v60 = vadd.s32 %v266_v47, %v257_v17  ;;  %v1711_v8 = vmul.f32 6.2831855, %v1665_v50  ;;  %v337_v9 = vor.u32 8388608, %v1670_v53  ;;  %vm363_vm12 = vcmp.lt.s32.totalorder %v1675_v11, 3 }
  0x4d   :  { %v1707_v2 = vadd.s32 %v244_v52, %v235_v21  ;;  %v1718_v30 = vxor.u32 %v1655_v37, %v58_v25  ;;  %vm362_vm14 = vcmp.lt.s32.totalorder %v1675_v11, 2  ;;  %v369_v50 = vsel %vm361_vm10, %v1695_v48, %v1699_v55 }
  0x4e   :  { %v271_v63 = vadd.s32 1, %v267_v60  ;;  %v370_v53 = vsel %vm364_vm11, %v357_v1, 920167782  ;;  %v373_v25 = vsel %vm361_vm10, %v1699_v55, %v354_v5  ;;  %v374_v37 = vsel %vm364_vm11, %v360_v7, 1326507024 }
  0x4f   :  { %vm270_vm13 = vc.u32 %v1707_v2, %v1693_v46  ;;  %v371_v14 = vsel %vm363_vm12, %v354_v5, %v370_v53  ;;  %v375_v15 = vsel %vm363_vm12, %v357_v1, %v374_v37  ;;  %v1740_v16 = vshll.u32 %v337_v9, 8 }
  0x50   :  { %v272_v58 = vsel %vm270_vm13, %v271_v63, %v267_v60  ;;  %v372_v13 = vsel %vm362_vm14, %v369_v50, %v371_v14  ;;  %v486_v17 = vand.u32 2139095040, %v1711_v8  ;;  %v70_v18 = vmul.u32 3545902487, %v1718_v30 }
  0x51   :  { %v273_v10 = vadd.s32 %v272_v58, %v268_v61  ;;  %v376_v21 = vsel %vm362_vm14, %v373_v25, %v375_v15  ;;  %v403_v22 = vshrl.u32 %v372_v13, 16  ;;  %v378_v24 = vand.u32 65535, %v1740_v16 }
  0x52   :  { %v379_v26 = vshrl.u32 %v1740_v16, 16  ;;  %v380_v27 = vand.u32 65535, %v376_v21  ;;  %v381_v31 = vshrl.u32 %v376_v21, 16  ;;  %v402_v33 = vand.u32 65535, %v372_v13 }
  0x53   :  { %v274_v3 = vadd.s32 536870912, %v273_v10  ;;  %v487_v40 = vshrl.u32 %v486_v17, 23  ;;  %v405_v42 = vmul.u32 %v403_v22, %v378_v24  ;;  %v74_v43 = vshrl.u32 %v70_v18, 15 }
  0x54   :  { %v382_v34 = vmul.u32 %v380_v27, %v378_v24  ;;  %v383_v35 = vmul.u32 %v381_v31, %v378_v24  ;;  %v384_v39 = vmul.u32 %v380_v27, %v379_v26  ;;  %v385_v44 = vmul.u32 %v381_v31, %v379_v26 }
  0x55   :  { %v1748_v32 = vshrl.u32 %v274_v3, 30  ;;  %v345_v52 = vshrl.u32 %v1585_v62, %v1677_v20  ;;  %v404_v56 = vmul.u32 %v402_v33, %v378_v24  ;;  %v406_v57 = vmul.u32 %v402_v33, %v379_v26 }
  0x56   :  { %v386_v45 = vshll.u32 %v383_v35, 16  ;;  %v388_v47 = vshll.u32 %v384_v39, 16  ;;  %v408_v61 = vshll.u32 %v405_v42, 16  ;;  %v1489_v1 = vadd.s32 4294967169, %v487_v40 }
  0x57   :  { %v276_v41 = vshll.u32 %v1748_v32, 30  ;;  %v387_v63 = vshrl.u32 %v383_v35, 16  ;;  %v407_v30 = vmul.u32 %v403_v22, %v379_v26  ;;  %v410_v58 = vshll.u32 %v406_v57, 16 }
  0x58   :  { %vm390_vm15 = vc.u32 %v382_v34, %v386_v45  ;;  %v392_v60 = vadd.s32 %v386_v45, %v382_v34  ;;  %v366_v20 = vsel %vm364_vm11, %v354_v5, 2102212464  ;;  %vm412_vm2 = vc.u32 %v404_v56, %v408_v61 }
  0x59   :  { %v1751_v51 = vsub.s32 %v273_v10, %v276_v41  ;;  %v391_v9 = vsel %vm390_vm15, 1, %v1591_v23  ;;  %v414_v10 = vadd.s32 %v408_v61, %v404_v56  ;;  %v389_v14 = vshrl.u32 %v384_v39, 16 }
  0x5a   :  { %v393_v50 = vadd.s32 %v391_v9, %v385_v44  ;;  %vm394_vm1 = vc.u32 %v392_v60, %v388_v47  ;;  %v409_v37 = vshrl.u32 %v405_v42, 16  ;;  %v413_v13 = vsel %vm412_vm2, 1, %v1591_v23 }
  0x5b   :  { %v279_v7 = vsub.s32 0, %v1751_v51  ;;  %vm278_vm0 = vcmp.lt.s32.totalorder %v1751_v51, 0  ;;  %v395_v53 = vsel %vm394_vm1, 1, %v1591_v23  ;;  %v415_v17 = vadd.s32 %v413_v13, %v407_v30 }
  0x5c   :  { %v397_v25 = vadd.s32 %v395_v53, %v393_v50  ;;  %vm416_vm3 = vc.u32 %v414_v10, %v410_v58  ;;  %v493_v3 = vadd.s32 1, %v1489_v1  ;;  %v365_v21 = vsel %vm361_vm10, %v345_v52, %v1695_v48 }
  0x5d   :  { %v280_v15 = vsel %vm278_vm0, %v279_v7, %v1751_v51  ;;  %v367_v5 = vsel %vm363_vm12, %v1699_v55, %v366_v20  ;;  %v417_v24 = vsel %vm416_vm3, 1, %v1591_v23  ;;  %v411_v26 = vshrl.u32 %v406_v57, 16 }
  0x5e   :  { %v398_v22 = vadd.s32 %v397_v25, %v387_v63  ;;  %v419_v27 = vadd.s32 %v417_v24, %v415_v17  ;;  %vm494_vm4 = vcmp.gt.s32.totalorder %v493_v3, 0  ;;  %v281_v31 = vclz %v280_v15 }
  0x5f   :  { %v1772_v34 = vadd.s32 %v414_v10, %v410_v58  ;;  %v78_v35 = vxor.u32 %v74_v43, %v70_v18  ;;  %v368_v39 = vsel %vm362_vm14, %v365_v21, %v367_v5  ;;  %v79_v40 = vshrl.u32 %v1614_v28, 16 }
  0x60   :  { %v1770_v33 = vadd.s32 %v398_v22, %v389_v14  ;;  %v420_v48 = vadd.s32 %v419_v27, %v409_v37  ;;  %v80_v55 = vshrl.u32 %v1616_v29, 16  ;;  %v81_v41 = vshrl.u32 %v1627_v59, 16 }
  0x61   :  { %v495_v42 = vsel %vm494_vm4, %v493_v3, 0  ;;  %v2256_v45 = vand.u32 2147483647, %v1711_v8  ;;  %v1484_v47 = vadd.s32 4294967294, %v281_v31  ;;  %v422_v52 = vmul.u32 %v1740_v16, %v368_v39 }
  0x62   :  { %v421_v44 = vadd.s32 %v420_v48, %v411_v26  ;;  %vm424_vm5 = vc.u32 %v1770_v33, %v1772_v34  ;;  %v82_v18 = vshrl.u32 %v78_v35, 16  ;;  %v497_v43 = vand.u32 31, %v495_v42 }
  0x63   :  { %v83_v56 = vcvt.s32.f32 %v79_v40  ;;  %v84_v57 = vcvt.s32.f32 %v80_v55  ;;  %v85_v28 = vcvt.s32.f32 %v81_v41  ;;  %v90_v60 = vand.u32 65535, %v78_v35 }
  0x64   :  { %v425_v11 = vadd.s32 1, %v421_v44  ;;  %v490_v59 = vand.u32 8388607, %v2256_v45  ;;  %v1785_v61 = vshrl.u32 %v495_v42, 5  ;;  %v1787_v1 = vsub.s32 32, %v497_v43 }
  0x65   :  { %vm1485_vm6 = vcmp.lt.s32.totalorder %v1484_v47, 0  ;;  %v500_v7 = vshll.u32 %v1585_v62, %v497_v43  ;;  %v503_v63 = vshll.u32 %v1586_v0, %v497_v43  ;;  %v506_v50 = vshll.u32 %v1587_v4, %v497_v43 }
  0x66   :  { %v426_v29 = vsel %vm424_vm5, %v425_v11, %v421_v44  ;;  %v501_v9 = vshrl.u32 %v1586_v0, %v1787_v1  ;;  %v504_v30 = vshrl.u32 %v1587_v4, %v1787_v1  ;;  %v507_v58 = vshrl.u32 %v1588_v6, %v1787_v1 }
  0x67   :  { %v427_v16 = vadd.s32 %v426_v29, %v422_v52  ;;  %v94_v20 = vcvt.s32.f32 %v90_v60  ;;  %v509_v10 = vshll.u32 %v1588_v6, %v497_v43  ;;  %v510_v14 = vshrl.u32 %v1589_v12, %v1787_v1 }
  0x68   :  { %v86_v25 = vcvt.s32.f32 %v82_v18  ;;  %v1801_v37 = vsel %vm1485_vm6, 0, %v1484_v47  ;;  %v491_v13 = vor.u32 8388608, %v490_v59  ;;  %vm515_vm7 = vcmp.lt.s32.totalorder %v1785_v61, 1 }
  0x69   :  { %v428_v53 = vadd.s32 536870912, %v427_v16  ;;  %v1806_v17 = vor.u32 %v501_v9, %v500_v7  ;;  %v1808_v3 = vor.u32 %v504_v30, %v503_v63  ;;  %v511_v21 = vor.u32 %v510_v14, %v509_v10 }
  0x6a   :  { %v1810_v5 = vor.u32 %v507_v58, %v506_v50  ;;  %v512_v22 = vshll.u32 %v1589_v12, %v497_v43  ;;  %v513_v24 = vshrl.u32 %v1590_v19, %v1787_v1  ;;  %vm518_vm8 = vcmp.lt.s32.totalorder %v1785_v61, 4 }
  0x6b   :  { %v1804_v15 = vshrl.u32 %v428_v53, 30  ;;  %v95_v26 = vadd.f32 0.5, %v83_v56  ;;  %v106_v27 = vadd.f32 0.5, %v94_v20  ;;  %vm517_vm9 = vcmp.lt.s32.totalorder %v1785_v61, 3 }
  0x6c   :  { %v96_v35 = vadd.f32 0.5, %v84_v57  ;;  %v514_v39 = vor.u32 %v513_v24, %v512_v22  ;;  %v524_v48 = vsel %vm518_vm8, %v511_v21, 920167782  ;;  %v289_v40 = vsub.s32 4294967266, %v1801_v37 }
  0x6d   :  { %v430_v31 = vshll.u32 %v1804_v15, 30  ;;  %vm516_vm10 = vcmp.lt.s32.totalorder %v1785_v61, 2  ;;  %v523_v41 = vsel %vm515_vm7, %v1806_v17, %v1808_v3  ;;  %v97_v42 = vadd.f32 0.5, %v85_v28 }
  0x6e   :  { %v98_v44 = vadd.f32 0.5, %v86_v25  ;;  %v525_v47 = vsel %vm517_vm9, %v1810_v5, %v524_v48  ;;  %v1831_v52 = vshll.u32 %v491_v13, 8  ;;  %v99_v18 = vmul.f32 1.5258789e-05, %v95_v26 }
  0x6f   :  { %v1821_v55 = vsub.s32 %v427_v16, %v430_v31  ;;  %v110_v11 = vmul.f32 1.5258789e-05, %v106_v27  ;;  %v269_v56 = vadd.s32 %v1693_v46, %v1707_v2  ;;  %v526_v57 = vsel %vm516_vm10, %v523_v41, %v525_v47 }
  0x70   :  { %v527_v28 = vsel %vm515_vm7, %v1808_v3, %v1810_v5  ;;  %v528_v60 = vsel %vm518_vm8, %v514_v39, 1326507024  ;;  %v285_v29 = vsub.s32 32, %v1801_v37  ;;  %v290_v59 = vadd.s32 127, %v289_v40 }
  0x71   :  { %vm432_vm11 = vcmp.lt.s32.totalorder %v1821_v55, 0  ;;  %v433_v43 = vsub.s32 0, %v1821_v55  ;;  %v529_v7 = vsel %vm517_vm9, %v511_v21, %v528_v60  ;;  %v100_v46 = vmul.f32 1.5258789e-05, %v96_v35 }
  0x72   :  { %v530_v63 = vsel %vm516_vm10, %v527_v28, %v529_v7  ;;  %v532_v9 = vand.u32 65535, %v1831_v52  ;;  %v533_v30 = vshrl.u32 %v1831_v52, 16  ;;  %v557_v20 = vshrl.u32 %v526_v57, 16 }
  0x73   :  { %v434_v16 = vsel %vm432_vm11, %v433_v43, %v1821_v55  ;;  %v534_v50 = vand.u32 65535, %v530_v63  ;;  %v535_v58 = vshrl.u32 %v530_v63, 16  ;;  %v101_v53 = vmul.f32 1.5258789e-05, %v97_v42 }
  0x74   :  { %v435_v2 = vclz %v434_v16  ;;  %v102_v10 = vmul.f32 1.5258789e-05, %v98_v44  ;;  %v1853_v25 = vmul.f32 6.2831855, %v110_v11  ;;  %v286_v13 = vshll.u32 %v1751_v51, %v1801_v37 }
  0x75   :  { %v287_v21 = vshrl.u32 %v269_v56, %v285_v29  ;;  %v291_v22 = vshll.u32 %v290_v59, 23  ;;  %1516 = vlog2.f32 %v99_v18  ;;  %v537_v24 = vmul.u32 %v535_v58, %v532_v9 }
  0x76   :  { %v1487_v14 = vadd.s32 4294967294, %v435_v2  ;;  %v556_v26 = vand.u32 65535, %v526_v57  ;;  %1518 = vlog2.f32 %v100_v46  ;;  %v1857_v31 = vmul.u32 %v534_v50, %v533_v30 }
  0x77   :  { %v1859_v35 = vmul.u32 %v557_v20, %v532_v9  ;;  %v423_v39 = vadd.s32 %v1772_v34, %v1770_v33  ;;  %v536_v41 = vmul.u32 %v534_v50, %v532_v9  ;;  %1520 = vlog2.f32 %v101_v53 }
  0x78   :  { %vm1488_vm12 = vcmp.lt.s32.totalorder %v1487_v14, 0  ;;  %v288_v51 = vor.u32 %v287_v21, %v286_v13  ;;  %v292_v37 = vor.u32 4788187, %v291_v22  ;;  %v640_v42 = vand.u32 2139095040, %v1853_v25 }
  0x79   :  { %v438_v27 = vsel %vm1488_vm12, 0, %v1487_v14  ;;  %v539_v47 = vmul.u32 %v535_v58, %v533_v30  ;;  %v540_v18 = vshll.u32 %v537_v24, 16  ;;  %v558_v11 = vmul.u32 %v556_v26, %v532_v9 }
  0x7a   :  { %v439_v48 = vsub.s32 32, %v438_v27  ;;  %v443_v40 = vsub.s32 4294967266, %v438_v27  ;;  %v440_v43 = vshll.u32 %v1821_v55, %v438_v27  ;;  %v542_v56 = vshll.u32 %v1857_v31, 16 }
  0x7b   :  { %v560_v57 = vmul.u32 %v556_v26, %v533_v30  ;;  %v562_v28 = vshll.u32 %v1859_v35, 16  ;;  %v1517_v33 = vpop.eup %1516  ;;  %vm544_vm13 = vc.u32 %v536_v41, %v540_v18  ;;  %v546_v29 = vadd.s32 %v540_v18, %v536_v41 }
  0x7c   :  { %v444_v44 = vadd.s32 127, %v443_v40  ;;  %v441_v34 = vshrl.u32 %v423_v39, %v439_v48  ;;  %v1519_v59 = vpop.eup %1518  ;;  %1522 = vlog2.f32 %v102_v10  ;;  %v293_v16 = vand.u32 2147483647, %v292_v37 }
  0x7d   :  { %v295_v7 = vcvt.s32.f32 %v288_v51  ;;  %v545_v46 = vsel %vm544_vm13, 1, %v1591_v23  ;;  %v541_v2 = vshrl.u32 %v537_v24, 16  ;;  %vm548_vm14 = vc.u32 %v546_v29, %v542_v56  ;;  %v1521_v9 = vpop.eup %1520 }
  0x7e   :  { %v445_v60 = vshll.u32 %v444_v44, 23  ;;  %v547_v63 = vadd.s32 %v545_v46, %v539_v47  ;;  %v561_v55 = vmul.u32 %v557_v20, %v533_v30  ;;  %v499_v50 = vshrl.u32 %v1585_v62, %v1787_v1 }
  0x7f   :  { %v549_v58 = vsel %vm548_vm14, 1, %v1591_v23  ;;  %v564_v53 = vshll.u32 %v560_v57, 16  ;;  %v641_v14 = vshrl.u32 %v640_v42, 23  ;;  %v442_v13 = vor.u32 %v441_v34, %v440_v43 }
  0x80   :  { %v446_v21 = vor.u32 4788187, %v445_v60  ;;  %v551_v22 = vadd.s32 %v549_v58, %v547_v63  ;;  %vm566_vm15 = vc.u32 %v558_v11, %v562_v28  ;;  %v296_v10 = vmul.f32 %v295_v7, %v293_v16 }
  0x81   :  { %v520_v24 = vsel %vm518_vm8, %v1810_v5, 2102212464  ;;  %v567_v26 = vsel %vm566_vm15, 1, %v1591_v23  ;;  %v568_v30 = vadd.s32 %v562_v28, %v558_v11  ;;  %v112_v20 = vmul.f32 0.6931472, %v1517_v33 }
  0x82   :  { %v543_v27 = vshrl.u32 %v1857_v31, 16  ;;  %v552_v1 = vadd.s32 %v551_v22, %v541_v2  ;;  %v569_v39 = vadd.s32 %v567_v26, %v561_v55  ;;  %v1523_v48 = vpop.eup %1522  ;;  %v519_v40 = vsel %vm515_vm7, %v499_v50, %v1806_v17 }
  0x83   :  { %v563_v41 = vshrl.u32 %v1859_v35, 16  ;;  %vm570_vm0 = vc.u32 %v568_v30, %v564_v53  ;;  %v1492_v51 = vadd.s32 4294967169, %v641_v14  ;;  %v447_v37 = vand.u32 2147483647, %v446_v21 }
  0x84   :  { %v449_v42 = vcvt.s32.f32 %v442_v13  ;;  %v521_v5 = vsel %vm517_vm9, %v1808_v3, %v520_v24  ;;  %v571_v44 = vsel %vm570_vm0, 1, %v1591_v23  ;;  %v297_v31 = vxor.u32 2147483648, %v296_v10 }
  0x85   :  { %v565_v47 = vshrl.u32 %v560_v57, 16  ;;  %v573_v18 = vadd.s32 %v571_v44, %v569_v39  ;;  %v647_v11 = vadd.s32 1, %v1492_v51  ;;  %v114_v43 = vmul.f32 0.6931472, %v1519_v59 }
  0x86   :  { %vm177_vm1 = vcmp.lt.s32.totalorder %v1620_v38, 0  ;;  %v1885_v17 = vadd.s32 %v552_v1, %v543_v27  ;;  %v1887_v35 = vadd.s32 %v568_v30, %v564_v53  ;;  %v116_v56 = vmul.f32 0.6931472, %v1521_v9 }
  0x87   :  { %v522_v28 = vsel %vm516_vm10, %v519_v40, %v521_v5  ;;  %v574_v33 = vadd.s32 %v573_v18, %v563_v41  ;;  %vm648_vm2 = vcmp.gt.s32.totalorder %v647_v11, 0  ;;  %v1891_v3 = vmul.f32 -2.0, %v112_v20 }
  0x88   :  { %vm1895_vm3 = vcmp.le.f32.partialorder %v175_v54, 0.7853982  ;;  %v450_v34 = vmul.f32 %v449_v42, %v447_v37  ;;  %v649_v60 = vsel %vm648_vm2, %v647_v11, 0  ;;  %v298_v29 = vsel %vm177_vm1, %v297_v31, %v296_v10 }
  0x89   :  { %v575_v59 = vadd.s32 %v574_v33, %v565_v47  ;;  %v2255_v16 = vand.u32 2147483647, %v1853_v25  ;;  %v651_v61 = vand.u32 31, %v649_v60  ;;  %v118_v7 = vmul.f32 0.6931472, %v1523_v48 }
  0x8a   :  { %v576_v46 = vmul.u32 %v1831_v52, %v522_v28  ;;  %vm578_vm4 = vc.u32 %v1885_v17, %v1887_v35  ;;  %v1905_v2 = vmul.f32 -2.0, %v114_v43  ;;  %v1907_v54 = vmul.f32 -2.0, %v116_v56 }
  0x8b   :  { %v579_v63 = vadd.s32 1, %v575_v59  ;;  %v1909_v55 = vsub.s32 32, %v651_v61  ;;  %1524 = vrsqrt.f32 %v1891_v3  ;;  %v1915_v9 = vsel %vm1895_vm3, %v1620_v38, %v298_v29 }
  0x8c   :  { %vm331_vm5 = vcmp.lt.s32.totalorder %v1623_v49, 0  ;;  %v451_v52 = vxor.u32 2147483648, %v450_v34  ;;  %v644_v58 = vand.u32 8388607, %v2255_v16  ;;  %v654_v53 = vshll.u32 %v1585_v62, %v651_v61 }
  0x8d   :  { %v580_v50 = vsel %vm578_vm4, %v579_v63, %v575_v59  ;;  %v657_v14 = vshll.u32 %v1586_v0, %v651_v61  ;;  %v655_v21 = vshrl.u32 %v1586_v0, %v1909_v55  ;;  %v658_v22 = vshrl.u32 %v1587_v4, %v1909_v55 }
  0x8e   :  { %v581_v13 = vadd.s32 %v580_v50, %v576_v46  ;;  %v663_v10 = vshll.u32 %v1588_v6, %v651_v61  ;;  %v1927_v24 = vmul.f32 -2.0, %v118_v7  ;;  %v1929_v26 = vshrl.u32 %v649_v60, 5 }
  0x8f   :  { %v660_v30 = vshll.u32 %v1587_v4, %v651_v61  ;;  %v661_v20 = vshrl.u32 %v1588_v6, %v1909_v55  ;;  %v1936_v27 = vmul.f32 %v1915_v9, %v1915_v9  ;;  %vm1940_vm6 = vcmp.le.f32.partialorder %v329_v36, 0.7853982 }
  0x90   :  { %v582_v1 = vadd.s32 536870912, %v581_v13  ;;  %v664_v39 = vshrl.u32 %v1589_v12, %v1909_v55  ;;  %v452_v4 = vsel %vm331_vm5, %v451_v52, %v450_v34  ;;  %v645_v48 = vor.u32 8388608, %v644_v58 }
  0x91   :  { %v666_v6 = vshll.u32 %v1589_v12, %v651_v61  ;;  %v667_v40 = vshrl.u32 %v1590_v19, %v1909_v55  ;;  %v1951_v41 = vpop.eup %1524  ;;  %v1955_v36 = vor.u32 %v655_v21, %v654_v53  ;;  %v1957_v37 = vor.u32 %v658_v22, %v657_v14 }
  0x92   :  { %v1953_v51 = vshrl.u32 %v582_v1, 30  ;;  %v665_v42 = vor.u32 %v664_v39, %v663_v10  ;;  %1526 = vrsqrt.f32 %v1905_v2  ;;  %v1960_v5 = vor.u32 %v661_v20, %v660_v30 }
  0x93   :  { %vm669_vm7 = vcmp.lt.s32.totalorder %v1929_v26, 1  ;;  %vm672_vm8 = vcmp.lt.s32.totalorder %v1929_v26, 4  ;;  %v311_v12 = vmul.f32 -0.00019511016, %v1936_v27  ;;  %vm671_vm9 = vcmp.lt.s32.totalorder %v1929_v26, 3 }
  0x94   :  { %v584_v19 = vshll.u32 %v1953_v51, 30  ;;  %v1970_v44 = vsel %vm1940_vm6, %v1623_v49, %v452_v4  ;;  %v668_v31 = vor.u32 %v667_v40, %v666_v6  ;;  %v678_v47 = vsel %vm672_vm8, %v665_v42, 920167782 }
  0x95   :  { %v1974_v18 = vshll.u32 %v645_v48, 8  ;;  %1528 = vrsqrt.f32 %v1907_v54  ;;  %vm670_vm10 = vcmp.lt.s32.totalorder %v1929_v26, 2  ;;  %v677_v43 = vsel %vm669_vm7, %v1955_v36, %v1957_v37 }
  0x96   :  { %v1977_v11 = vsub.s32 %v581_v13, %v584_v19  ;;  %v1986_v56 = vmul.f32 %v1951_v41, %v1891_v3  ;;  %1530 = vrsqrt.f32 %v1927_v24  ;;  %v304_v28 = vmul.f32 -0.001358992, %v1936_v27 }
  0x97   :  { %v679_v33 = vsel %vm671_vm9, %v1960_v5, %v678_v47  ;;  %v1995_v34 = vmul.f32 %v1970_v44, %v1970_v44  ;;  %v681_v29 = vsel %vm669_vm7, %v1957_v37, %v1960_v5  ;;  %v312_v61 = vadd.f32 0.008332121, %v311_v12 }
  0x98   :  { %vm586_vm11 = vcmp.lt.s32.totalorder %v1977_v11, 0  ;;  %v587_v60 = vsub.s32 0, %v1977_v11  ;;  %v2003_v59 = vpop.eup %1526  ;;  %v680_v7 = vsel %vm670_vm10, %v677_v43, %v679_v33  ;;  %v682_v46 = vsel %vm672_vm8, %v668_v31, 1326507024 }
  0x99   :  { %v686_v63 = vand.u32 65535, %v1974_v18  ;;  %v458_v52 = vmul.f32 -0.001358992, %v1995_v34  ;;  %v683_v58 = vsel %vm671_vm9, %v665_v42, %v682_v46  ;;  %v687_v53 = vshrl.u32 %v1974_v18, 16 }
  0x9a   :  { %v588_v50 = vsel %vm586_vm11, %v587_v60, %v1977_v11  ;;  %v684_v13 = vsel %vm670_vm10, %v681_v29, %v683_v58  ;;  %v710_v21 = vand.u32 65535, %v680_v7  ;;  %v711_v22 = vshrl.u32 %v680_v7, 16 }
  0x9b   :  { %v589_v14 = vclz %v588_v50  ;;  %v2017_v10 = vpop.eup %1528  ;;  %v2021_v30 = vmul.f32 %v2003_v59, %v1905_v2  ;;  %v305_v20 = vadd.f32 0.041655596, %v304_v28  ;;  %v688_v1 = vand.u32 65535, %v684_v13 }
  0x9c   :  { %v689_v39 = vshrl.u32 %v684_v13, 16  ;;  %v2023_v4 = vpop.eup %1530  ;;  %v313_v48 = vmul.f32 %v312_v61, %v1936_v27  ;;  %v577_v6 = vadd.s32 %v1887_v35, %v1885_v17  ;;  %v713_v42 = vmul.u32 %v711_v22, %v686_v63 }
  0x9d   :  { %v1490_v40 = vadd.s32 4294967294, %v589_v14  ;;  %v465_v12 = vmul.f32 -0.00019511016, %v1995_v34  ;;  %v690_v19 = vmul.u32 %v688_v1, %v686_v63  ;;  %v692_v47 = vmul.u32 %v688_v1, %v687_v53 }
  0x9e   :  { %v691_v31 = vmul.u32 %v689_v39, %v686_v63  ;;  %v459_v43 = vadd.f32 0.041655596, %v458_v52  ;;  %v712_v33 = vmul.u32 %v710_v21, %v686_v63  ;;  %v714_v28 = vmul.u32 %v710_v21, %v687_v53 }
  0x9f   :  { %vm1491_vm12 = vcmp.lt.s32.totalorder %v1490_v40, 0  ;;  %v693_v29 = vmul.u32 %v689_v39, %v687_v53  ;;  %v716_v46 = vshll.u32 %v713_v42, 16  ;;  %v696_v17 = vshll.u32 %v692_v47, 16 }
  0xa0   :  { %v592_v60 = vsel %vm1491_vm12, 0, %v1490_v40  ;;  %v694_v7 = vshll.u32 %v691_v31, 16  ;;  %v466_v35 = vadd.f32 0.008332121, %v465_v12  ;;  %v653_v14 = vshrl.u32 %v1585_v62, %v1909_v55 }
  0xa1   :  { %v593_v50 = vsub.s32 32, %v592_v60  ;;  %v594_v61 = vshll.u32 %v1977_v11, %v592_v60  ;;  %v597_v58 = vsub.s32 4294967266, %v592_v60  ;;  %v715_v13 = vmul.u32 %v711_v22, %v687_v53 }
  0xa2   :  { %vm698_vm13 = vc.u32 %v690_v19, %v694_v7  ;;  %v700_v21 = vadd.s32 %v694_v7, %v690_v19  ;;  %v674_v39 = vsel %vm672_vm8, %v1960_v5, 2102212464  ;;  %v695_v40 = vshrl.u32 %v691_v31, 16 }
  0xa3   :  { %v595_v1 = vshrl.u32 %v577_v6, %v593_v50  ;;  %v598_v52 = vadd.s32 127, %v597_v58  ;;  %v699_v63 = vsel %vm698_vm13, 1, %v1591_v23  ;;  %v718_v11 = vshll.u32 %v714_v28, 16 }
  0xa4   :  { %v701_v16 = vadd.s32 %v699_v63, %v693_v29  ;;  %vm702_vm14 = vc.u32 %v700_v21, %v696_v17  ;;  %vm720_vm15 = vc.u32 %v712_v33, %v716_v46  ;;  %v697_v12 = vshrl.u32 %v692_v47, 16 }
  0xa5   :  { %v596_v60 = vor.u32 %v595_v1, %v594_v61  ;;  %v599_v45 = vshll.u32 %v598_v52, 23  ;;  %v703_v62 = vsel %vm702_vm14, 1, %v1591_v23  ;;  %v721_v55 = vsel %vm720_vm15, 1, %v1591_v23 }
  0xa6   :  { %v722_v53 = vadd.s32 %v716_v46, %v712_v33  ;;  %v705_v19 = vadd.s32 %v703_v62, %v701_v16  ;;  %v723_v7 = vadd.s32 %v721_v55, %v715_v13  ;;  %v467_v50 = vmul.f32 %v466_v35, %v1995_v34 }
  0xa7   :  { %v600_v22 = vor.u32 4788187, %v599_v45  ;;  %v603_v6 = vcvt.s32.f32 %v596_v60  ;;  %v673_v5 = vsel %vm669_vm7, %v653_v14, %v1955_v36  ;;  %v717_v31 = vshrl.u32 %v713_v42, 16 }
  0xa8   :  { %vm724_vm0 = vc.u32 %v722_v53, %v718_v11  ;;  %v675_v47 = vsel %vm671_vm9, %v1957_v37, %v674_v39  ;;  %v706_v61 = vadd.s32 %v705_v19, %v695_v40  ;;  %v306_v45 = vmul.f32 %v305_v20, %v1936_v27 }
  0xa9   :  { %v601_v29 = vand.u32 2147483647, %v600_v22  ;;  %v725_v33 = vsel %vm724_vm0, 1, %v1591_v23  ;;  %v314_v16 = vadd.f32 -0.16666654, %v313_v48  ;;  %v719_v46 = vshrl.u32 %v714_v28, 16 }
  0xaa   :  { %v727_v58 = vadd.s32 %v725_v33, %v723_v7  ;;  %v460_v17 = vmul.f32 %v459_v43, %v1995_v34  ;;  %v2048_v13 = vadd.s32 %v706_v61, %v697_v12  ;;  %v2050_v36 = vadd.s32 %v722_v53, %v718_v11 }
  0xab   :  { %v604_v35 = vmul.f32 %v603_v6, %v601_v29  ;;  %v468_v42 = vadd.f32 -0.16666654, %v467_v50  ;;  %vm485_vm2 = vcmp.lt.s32.totalorder %v1711_v8, 0  ;;  %v676_v37 = vsel %vm670_vm10, %v673_v5, %v675_v47 }
  0xac   :  { %v728_v14 = vadd.s32 %v727_v58, %v717_v31  ;;  %v125_v23 = vmul.f32 %v1951_v41, %v1986_v56  ;;  %v137_v20 = vmul.f32 %v2003_v59, %v2021_v30  ;;  %v299_v48 = vsub.s32 4, %v1748_v32 }
  0xad   :  { %v605_v43 = vxor.u32 2147483648, %v604_v35  ;;  %v307_v28 = vadd.f32 -0.4999988, %v306_v45  ;;  %v315_v1 = vmul.f32 %v314_v16, %v1936_v27  ;;  %v2261_v52 = vand.u32 2147483647, %v1711_v8 }
  0xae   :  { %v729_v26 = vadd.s32 %v728_v14, %v719_v46  ;;  %v461_v21 = vadd.f32 -0.4999988, %v460_v17  ;;  %v730_v39 = vmul.u32 %v1974_v18, %v676_v37  ;;  %vm732_vm7 = vc.u32 %v2048_v13, %v2050_v36 }
  0xaf   :  { %vm2063_vm4 = vcmp.le.f32.partialorder %v2261_v52, 0.7853982  ;;  %v606_v56 = vsel %vm485_vm2, %v605_v43, %v604_v35  ;;  %v453_v30 = vsub.s32 4, %v1804_v15  ;;  %v469_v40 = vmul.f32 %v468_v42, %v1995_v34 }
  0xb0   :  { %v733_v11 = vadd.s32 1, %v729_v26  ;;  %v126_v60 = vmul.f32 0.5, %v125_v23  ;;  %v2077_v12 = vsel %vm2063_vm4, %v1711_v8, %v606_v56  ;;  %v138_v62 = vmul.f32 0.5, %v137_v20 }
  0xb1   :  { %v300_v55 = vsel %vm177_vm1, %v299_v48, %v1748_v32  ;;  %v308_v18 = vmul.f32 %v307_v28, %v1936_v27  ;;  %v316_v22 = vadd.f32 1.0, %v315_v1  ;;  %v462_v6 = vmul.f32 %v461_v21, %v1995_v34 }
  0xb2   :  { %v734_v53 = vsel %vm732_vm7, %v733_v11, %v729_v26  ;;  %v133_v7 = vand.u32 2147483648, %v1891_v3  ;;  %v454_v50 = vsel %vm331_vm5, %v453_v30, %v1804_v15  ;;  %v470_v5 = vadd.f32 1.0, %v469_v40 }
  0xb3   :  { %v735_v19 = vadd.s32 %v734_v53, %v730_v39  ;;  %v2090_v31 = vmul.f32 %v2077_v12, %v2077_v12  ;;  %v127_v29 = vsub.f32 1.5, %v126_v60  ;;  %v148_v32 = vmul.f32 %v2017_v10, %v1907_v54 }
  0xb4   :  { %v2096_v27 = vsel %vm1895_vm3, 0, %v300_v55  ;;  %vm130_vm1 = vcmp.eq.f32.partialorder %v1891_v3, inf  ;;  %v139_v47 = vsub.f32 1.5, %v138_v62  ;;  %v160_v15 = vmul.f32 %v2023_v4, %v1927_v24 }
  0xb5   :  { %v736_v34 = vadd.s32 536870912, %v735_v19  ;;  %v2101_v61 = vadd.f32 1.0, %v308_v18  ;;  %v319_v33 = vand.u32 3, %v2096_v27  ;;  %v2105_v45 = vmul.f32 %v316_v22, %v1915_v9 }
  0xb6   :  { %v456_v16 = vsel %vm1940_vm6, 0, %v454_v50  ;;  %v2109_v57 = vadd.f32 1.0, %v462_v6  ;;  %v2114_v58 = vmul.f32 %v470_v5, %v1970_v44  ;;  %v612_v35 = vmul.f32 -0.001358992, %v2090_v31 }
  0xb7   :  { %v2111_v46 = vshrl.u32 %v736_v34, 30  ;;  %v473_v17 = vand.u32 3, %v456_v16  ;;  %v619_v42 = vmul.f32 -0.00019511016, %v2090_v31  ;;  %v128_v37 = vmul.f32 %v1951_v41, %v127_v29 }
  0xb8   :  { %vm142_vm3 = vcmp.eq.f32.partialorder %v1905_v2, inf  ;;  %v149_v9 = vmul.f32 %v2017_v10, %v148_v32  ;;  %vm132_vm5 = vcmp.eq.f32.partialorder %v1891_v3, 0.0  ;;  %v140_v14 = vmul.f32 %v2003_v59, %v139_v47 }
  0xb9   :  { %v738_v0 = vshll.u32 %v2111_v46, 30  ;;  %v161_v44 = vmul.f32 %v2023_v4, %v160_v15  ;;  %vm321_vm6 = vcmp.eq.s32.totalorder %v319_v33, 0  ;;  %v325_v23 = vxor.u32 2147483648, %v2101_v61 }
  0xba   :  { %vm144_vm8 = vcmp.eq.f32.partialorder %v1905_v2, 0.0  ;;  %v322_v20 = vxor.u32 2147483648, %v2105_v45  ;;  %vm324_vm9 = vcmp.eq.s32.totalorder %v319_v33, 2  ;;  %v479_v41 = vxor.u32 2147483648, %v2109_v57 }
  0xbb   :  { %v739_v48 = vsub.s32 %v735_v19, %v738_v0  ;;  %v476_v43 = vxor.u32 2147483648, %v2114_v58  ;;  %vm478_vm10 = vcmp.eq.s32.totalorder %v473_v17, 2  ;;  %v613_v28 = vadd.f32 0.041655596, %v612_v35 }
  0xbc   :  { %v620_v1 = vadd.f32 0.008332121, %v619_v42  ;;  %v129_v59 = vmul.f32 %v128_v37, %v1891_v3  ;;  %vm475_vm11 = vcmp.eq.s32.totalorder %v473_v17, 0  ;;  %v141_v26 = vmul.f32 %v140_v14, %v1905_v2 }
  0xbd   :  { %vm740_vm12 = vcmp.lt.s32.totalorder %v739_v48, 0  ;;  %v741_v52 = vsub.s32 0, %v739_v48  ;;  %vm320_vm13 = vcmp.lt.s32.totalorder %v319_v33, 2  ;;  %v326_v21 = vsel %vm324_vm9, %v325_v23, %v2105_v45 }
  0xbe   :  { %vm474_vm14 = vcmp.lt.s32.totalorder %v473_v17, 2  ;;  %v323_v56 = vsel %vm321_vm6, %v2101_v61, %v322_v20  ;;  %v480_v39 = vsel %vm478_vm10, %v479_v41, %v2114_v58  ;;  %v607_v30 = vsub.s32 4, %v1953_v51 }
  0xbf   :  { %v742_v40 = vsel %vm740_vm12, %v741_v52, %v739_v48  ;;  %v477_v11 = vsel %vm475_vm11, %v2109_v57, %v476_v43  ;;  %v614_v60 = vmul.f32 %v613_v28, %v2090_v31  ;;  %v621_v62 = vmul.f32 %v620_v1, %v2090_v31 }
  0xc0   :  { %v743_v55 = vclz %v742_v40  ;;  %v131_v18 = vsel %vm130_vm1, %v1891_v3, %v129_v59  ;;  %v145_v53 = vand.u32 2147483648, %v1905_v2  ;;  %v2152_v22 = vmul.f32 0.5, %v149_v9 }
  0xc1   :  { %v2154_v6 = vmul.f32 0.5, %v161_v44  ;;  %v143_v19 = vsel %vm142_vm3, %v1905_v2, %v141_v26  ;;  %vm318_vm15 = vweird.f32 %v1620_v38  ;;  %vm472_vm0 = vweird.f32 %v1623_v49 }
  0xc2   :  { %v1493_v50 = vadd.s32 4294967294, %v743_v55  ;;  %v327_v5 = vsel %vm320_vm13, %v323_v56, %v326_v21  ;;  %v481_v29 = vsel %vm474_vm14, %v477_v11, %v480_v39  ;;  %v608_v32 = vsel %vm485_vm2, %v607_v30, %v1953_v51 }
  0xc3   :  { %v1102_v34 = vadd.s32 3, %v456_v16  ;;  %v615_v47 = vadd.f32 -0.4999988, %v614_v60  ;;  %v622_v15 = vadd.f32 -0.16666654, %v621_v62  ;;  %v731_v35 = vadd.s32 %v2050_v36, %v2048_v13 }
  0xc4   :  { %vm1494_vm7 = vcmp.lt.s32.totalorder %v1493_v50, 0  ;;  %v134_v42 = vsel %vm132_vm5, %v133_v7, %v131_v18  ;;  %v947_v17 = vadd.s32 3, %v2096_v27  ;;  %v146_v9 = vsel %vm144_vm8, %v145_v53, %v143_v19 }
  0xc5   :  { %v746_v33 = vsel %vm1494_vm7, 0, %v1493_v50  ;;  %v1103_v37 = vand.u32 3, %v1102_v34  ;;  %v328_v14 = vsel %vm318_vm15, nan, %v327_v5  ;;  %v482_v13 = vsel %vm472_vm0, nan, %v481_v29 }
  0xc6   :  { %v747_v51 = vsub.s32 32, %v746_v33  ;;  %v748_v16 = vshll.u32 %v739_v48, %v746_v33  ;;  %v751_v0 = vsub.s32 4294967266, %v746_v33  ;;  %v610_v3 = vsel %vm2063_vm4, 0, %v608_v32 }
  0xc7   :  { %v948_v36 = vand.u32 3, %v947_v17  ;;  %v616_v7 = vmul.f32 %v615_v47, %v2090_v31  ;;  %v623_v27 = vmul.f32 %v622_v15, %v2090_v31  ;;  %vm1105_vm3 = vcmp.eq.s32.totalorder %v1103_v37, 0 }
  0xc8   :  { %v749_v44 = vshrl.u32 %v731_v35, %v747_v51  ;;  %v752_v2 = vadd.s32 127, %v751_v0  ;;  %vm1108_vm5 = vcmp.eq.s32.totalorder %v1103_v37, 2  ;;  %v791_v1 = vmul.f32 %v328_v14, %v134_v42 }
  0xc9   :  { %vm950_vm2 = vcmp.eq.s32.totalorder %v948_v36, 0  ;;  %vm953_vm1 = vcmp.eq.s32.totalorder %v948_v36, 2  ;;  %v792_v59 = vmul.f32 %v482_v13, %v146_v9  ;;  %vm949_vm6 = vcmp.lt.s32.totalorder %v948_v36, 2 }
  0xca   :  { %v750_v48 = vor.u32 %v749_v44, %v748_v16  ;;  %v753_v28 = vshll.u32 %v752_v2, 23  ;;  %v952_v63 = vsel %vm950_vm2, %v2101_v61, %v322_v20  ;;  %v955_v52 = vsel %vm953_vm1, %v325_v23, %v2105_v45 }
  0xcb   :  { %vm1104_vm4 = vcmp.lt.s32.totalorder %v1103_v37, 2  ;;  %v796_v21 = vmul.f32 0.42857143, %v792_v59  ;;  %v1107_v56 = vsel %vm1105_vm3, %v2109_v57, %v476_v43  ;;  %v624_v39 = vadd.f32 1.0, %v623_v27 }
  0xcc   :  { %v754_v31 = vor.u32 4788187, %v753_v28  ;;  %v757_v26 = vcvt.s32.f32 %v750_v48  ;;  %v795_v30 = vmul.f32 0.42857143, %v791_v1  ;;  %v956_v40 = vsel %vm949_vm6, %v952_v63, %v955_v52 }
  0xcd   :  { %v1110_v20 = vsel %vm1108_vm5, %v479_v41, %v2114_v58  ;;  %v800_v60 = vadd.f32 1.0, %v796_v21  ;;  %v957_v61 = vsel %vm318_vm15, nan, %v956_v40  ;;  %v1257_v45 = vadd.s32 3, %v610_v3 }
  0xce   :  { %v755_v11 = vand.u32 2147483647, %v754_v31  ;;  %v151_v23 = vsub.f32 1.5, %v2152_v22  ;;  %v627_v62 = vand.u32 3, %v610_v3  ;;  %v761_v55 = vsub.s32 4, %v2111_v46 }
  0xcf   :  { %v1111_v43 = vsel %vm1104_vm4, %v1107_v56, %v1110_v20  ;;  %v617_v18 = vadd.f32 1.0, %v616_v7  ;;  %vm639_vm8 = vcmp.lt.s32.totalorder %v1853_v25, 0  ;;  %vm154_vm9 = vcmp.eq.f32.partialorder %v1907_v54, inf }
  0xd0   :  { %v758_v53 = vmul.f32 %v757_v26, %v755_v11  ;;  %v1112_v57 = vsel %vm472_vm0, nan, %v1111_v43  ;;  %v625_v38 = vmul.f32 %v624_v39, %v2077_v12  ;;  %v799_v58 = vadd.f32 1.0, %v795_v30 }
  0xd1   :  { %v1423_v41 = vmul.f32 %v957_v61, %v134_v42  ;;  %v1424_v19 = vmul.f32 %v1112_v57, %v146_v9  ;;  %v2264_v22 = vand.u32 2147483647, %v1853_v25  ;;  %v1258_v29 = vand.u32 3, %v1257_v45 }
  0xd2   :  { %v759_v5 = vxor.u32 2147483648, %v758_v53  ;;  %v1441_v32 = vrot.slane %v800_v60, 6  ;;  %v152_v34 = vmul.f32 %v2017_v10, %v151_v23  ;;  %vm629_vm11 = vcmp.eq.s32.totalorder %v627_v62, 0 }
  0xd3   :  { %vm2208_vm10 = vcmp.le.f32.partialorder %v2264_v22, 0.7853982  ;;  %vm632_vm12 = vcmp.eq.s32.totalorder %v627_v62, 2  ;;  %v762_v49 = vsel %vm639_vm8, %v761_v55, %v2111_v46  ;;  %v1427_v47 = vmul.f32 0.42857143, %v1423_v41 }
  0xd4   :  { %v760_v12 = vsel %vm639_vm8, %v759_v5, %v758_v53  ;;  %v1428_v15 = vmul.f32 0.42857143, %v1424_v19  ;;  %vm1444_vm13 = vcmask 1041408   ;;  %v630_v35 = vxor.u32 2147483648, %v625_v38 }
  0xd5   :  { %v633_v42 = vxor.u32 2147483648, %v617_v18  ;;  %v763_v33 = vsel %vm2208_vm10, %v1853_v25, %v760_v12  ;;  %v2222_v10 = vsel %vm1444_vm13, %v799_v58, %v1441_v32  ;;  %vm1260_vm14 = vcmp.eq.s32.totalorder %v1258_v29, 0 }
  0xd6   :  { %v765_v17 = vmul.f32 %v763_v33, %v763_v33  ;;  %v1431_v37 = vadd.f32 1.0, %v1427_v47  ;;  %v1432_v9 = vadd.f32 1.0, %v1428_v15  ;;  %v153_v46 = vmul.f32 %v152_v34, %v1907_v54 }
  0xd7   :  { %v163_v51 = vsub.f32 1.5, %v2154_v6  ;;  %vm628_vm15 = vcmp.lt.s32.totalorder %v627_v62, 2  ;;  %vm1263_vm0 = vcmp.eq.s32.totalorder %v1258_v29, 2  ;;  %v764_v16 = vsel %vm2208_vm10, 0, %v762_v49 }
  0xd8   :  { %v766_v0 = vmul.f32 -0.001358992, %v765_v17  ;;  %v773_v14 = vmul.f32 -0.00019511016, %v765_v17  ;;  %v1457_v13 = vrot.slane %v1432_v9, 6  ;;  %v631_v3 = vsel %vm629_vm11, %v617_v18, %v630_v35 }
  0xd9   :  { %v634_v36 = vsel %vm632_vm12, %v633_v42, %v625_v38  ;;  %vm1259_vm7 = vcmp.lt.s32.totalorder %v1258_v29, 2  ;;  %v1262_v7 = vsel %vm1260_vm14, %v617_v18, %v630_v35  ;;  %v1265_v2 = vsel %vm1263_vm0, %v633_v42, %v625_v38 }
  0xda   :  { %v767_v27 = vadd.f32 0.041655596, %v766_v0  ;;  %v774_v44 = vadd.f32 0.008332121, %v773_v14  ;;  %v2231_v48 = vsel %vm1444_vm13, %v1431_v37, %v1457_v13  ;;  %v157_v6 = vand.u32 2147483648, %v1907_v54 }
  0xdb   :  { %v1412_v28 = vadd.s32 3, %v764_v16  ;;  %v155_v1 = vsel %vm154_vm9, %v1907_v54, %v153_v46  ;;  %vm156_vm2 = vcmp.eq.f32.partialorder %v1907_v54, 0.0  ;;  %v164_v52 = vmul.f32 %v2023_v4, %v163_v51  ;;  %v1435_v46 = vld [vmem:[#allocation4] sm:$0xff]  ;;  %v1436_v51 = vld [vmem:[#allocation4 + $0x8] sm:$0xff] }
  0xdc   :  { %v768_v59 = vmul.f32 %v767_v27, %v765_v17  ;;  %v775_v63 = vmul.f32 %v774_v44, %v765_v17  ;;  %vm626_vm1 = vweird.f32 %v1711_v8  ;;  %v635_v31 = vsel %vm628_vm15, %v631_v3, %v634_v36 }
  0xdd   :  { %v1266_v26 = vsel %vm1259_vm7, %v1262_v7, %v1265_v2  ;;  %v158_v39 = vsel %vm156_vm2, %v157_v6, %v155_v1  ;;  %v781_v30 = vand.u32 3, %v764_v16  ;;  %v1413_v40 = vand.u32 3, %v1412_v28 }
  0xde   :  { %v769_v21 = vadd.f32 -0.4999988, %v768_v59  ;;  %v776_v56 = vadd.f32 -0.16666654, %v775_v63  ;;  %v636_v20 = vsel %vm626_vm1, nan, %v635_v31  ;;  %v1267_v61 = vsel %vm626_vm1, nan, %v1266_v26 }
  0xdf   :  { %v165_v54 = vmul.f32 %v164_v52, %v1927_v24  ;;  %vm166_vm3 = vcmp.eq.f32.partialorder %v1927_v24, inf  ;;  %vm786_vm5 = vcmp.eq.s32.totalorder %v781_v30, 2  ;;  %v793_v8 = vmul.f32 %v636_v20, %v158_v39 }
  0xe0   :  { %v770_v11 = vmul.f32 %v769_v21, %v765_v17  ;;  %v777_v60 = vmul.f32 %v776_v56, %v765_v17  ;;  %vm1418_vm6 = vcmp.eq.s32.totalorder %v1413_v40, 2  ;;  %v1425_v23 = vmul.f32 %v1267_v61, %v158_v39 }
  0xe1   :  { %vm168_vm4 = vcmp.eq.f32.partialorder %v1927_v24, 0.0  ;;  %v169_v62 = vand.u32 2147483648, %v1927_v24  ;;  %v167_v18 = vsel %vm166_vm3, %v1927_v24, %v165_v54  ;;  %vm782_vm8 = vcmp.lt.s32.totalorder %v781_v30, 2 }
  0xe2   :  { %v771_v45 = vadd.f32 1.0, %v770_v11  ;;  %v778_v4 = vadd.f32 1.0, %v777_v60  ;;  %vm783_vm9 = vcmp.eq.s32.totalorder %v781_v30, 0  ;;  %vm1415_vm10 = vcmp.eq.s32.totalorder %v1413_v40, 0 }
  0xe3   :  { %vm1414_vm11 = vcmp.lt.s32.totalorder %v1413_v40, 2  ;;  %vm780_vm12 = vweird.f32 %v1853_v25  ;;  %v797_v58 = vmul.f32 0.42857143, %v793_v8  ;;  %v1429_v41 = vmul.f32 0.42857143, %v1425_v23 }
  0xe4   :  { %v779_v55 = vmul.f32 %v778_v4, %v763_v33  ;;  %v787_v43 = vxor.u32 2147483648, %v771_v45  ;;  %v170_v19 = vsel %vm168_vm4, %v169_v62, %v167_v18  ;;  %vm1446_vm13 = vcmask 1045508  }
  0xe5   :  { %v801_v24 = vadd.f32 1.0, %v797_v58  ;;  %v1433_v47 = vadd.f32 1.0, %v1429_v41  ;;  %vm1448_vm14 = vcmask 1043456  }
  0xe6   :  { %v784_v53 = vxor.u32 2147483648, %v779_v55  ;;  %v788_v57 = vsel %vm786_vm5, %v787_v43, %v779_v55  ;;  %v1420_v38 = vsel %vm1418_vm6, %v787_v43, %v779_v55 }
  0xe7   :  { %v1442_v17 = vrot.slane %v801_v24, 4  ;;  %v1458_v37 = vrot.slane %v1433_v47, 4 }
  0xe8   :  { %v785_v22 = vsel %vm783_vm9, %v771_v45, %v784_v53  ;;  %v1417_v50 = vsel %vm1415_vm10, %v771_v45, %v784_v53 }
  0xe9   :  { %v789_v5 = vsel %vm782_vm8, %v785_v22, %v788_v57  ;;  %v1421_v29 = vsel %vm1414_vm11, %v1417_v50, %v1420_v38 }
  0xea   :  { %v790_v32 = vsel %vm780_vm12, nan, %v789_v5  ;;  %v1422_v34 = vsel %vm780_vm12, nan, %v1421_v29 }
  0xeb   :  { %v794_v49 = vmul.f32 %v790_v32, %v170_v19  ;;  %v1426_v12 = vmul.f32 %v1422_v34, %v170_v19 }
  0xed   :  { %v798_v15 = vmul.f32 0.42857143, %v794_v49  ;;  %v1430_v35 = vmul.f32 0.42857143, %v1426_v12 }
  0xef   :  { %v802_v42 = vadd.f32 1.0, %v798_v15  ;;  %v1434_v33 = vadd.f32 1.0, %v1430_v35 }
  0xf1   :  { %v1443_v25 = vrot.slane %v802_v42, 2  ;;  %v1459_v9 = vrot.slane %v1434_v33, 2 }
  0xf3   :  { %v1447_v16 = vsel %vm1446_vm13, %v1442_v17, %v1443_v25  ;;  %v1461_v0 = vsel %vm1446_vm13, %v1458_v37, %v1459_v9 }
  0xf4   :  { %v1449_v14 = vsel %vm1448_vm14, %v2222_v10, %v1447_v16  ;;  %v1462_v13 = vsel %vm1448_vm14, %v2231_v48, %v1461_v0 }
  0xf5   :  { %v1451_v3 = vmul.f32 %v1449_v14, %v1435_v46  ;;  %v1464_v36 = vmul.f32 %v1462_v13, %v1436_v51 }
  0xf7   :  { %1452 = vst [vmem:[#allocation7] sm:$0xff] %v1451_v3 }
  0xf8   :  { %1465 = vst [vmem:[#allocation7 + $0x8] sm:$0xff] %v1464_v36 }
  0xf9   :  { %1476 = dma.vmem_to_hbm [thread:$0]  %s1472_s1, 256, %s1474_s19, [#allocation6]  }
  0xfa   :  { %1582 = dma.done.wait [#allocation6], 256  }
  0xfb   :  { %1583 = vsyncadd [#allocation6], 4294967040 }
  0xfc   :  { %1481 = vsyncpa [#allocation5], 1 }
  0xfd   :  { %1482 = vsyncpa [#allocation6], 1 }

</bundles_post_ra>
